<compile_context>
chip_gen: v5e
topology: v5e:2x2
jax: 0.10.0
libtpu: 0.0.40
codegen_flags: <defaults>
</compile_context>

<pallas_src>
import math

import jax
import jax.numpy as jnp
from jax.experimental import pallas as pl
from jax.experimental.pallas import tpu as pltpu


def affine22_kernel(scales_ref, x0_ref, x1_ref, x2_ref, x3_ref,
                    o0_ref, o1_ref, o2_ref, o3_ref):
    # scales_ref: (2, W) f32 [row 0: alpha_sym tiled, row 1: alpha_asym tiled]
    # x*_ref / o*_ref: (TM, W) tiles.
    shp = x0_ref.shape
    # Hoist the (1, W) -> (TM, W) broadcasts so each is done once and reused
    # for the two multiplies that share a scale (JAX does not CSE broadcasts).
    a_sym = jnp.broadcast_to(scales_ref[0:1, :], shp)
    a_asym = jnp.broadcast_to(scales_ref[1:2, :], shp)
    # f32 scale * activation promotes to f32 (matches PyTorch); the output
    # dtype is the promoted dtype, so the .astype below is usually a no-op.
    o0_ref[...] = (x0_ref[...] * a_sym).astype(o0_ref.dtype)
    o1_ref[...] = (x1_ref[...] * a_sym).astype(o1_ref.dtype)
    o2_ref[...] = (x2_ref[...] * a_asym).astype(o2_ref.dtype)
    o3_ref[...] = (x3_ref[...] * a_asym).astype(o3_ref.dtype)
    # TODO(synk): beta_sym / beta_asym exist as parameters in __init__ but are
    # never used by the reachable forward path (self.beta is always None), so
    # they are intentionally not applied here.


def _vmem_capacity_bytes():
    """Physical VMEM per TensorCore; conservative v7x default if unavailable."""
    try:
        info = pltpu.get_tpu_info()
        cap = getattr(info, "vmem_capacity_bytes", None)
        if cap:
            return int(cap)
    except Exception:
        pass
    return 64 * 1024 * 1024


def _pick_width(total, C):
    """Flattened width W with W % C == 0 and total % W == 0 (period-preserving)."""
    lcm_c128 = (C * 128) // math.gcd(C, 128)
    if total % lcm_c128 == 0:
        W = lcm_c128                      # lane-dense: unmasked full-width stores
        # Widen (still lane-dense) for wider stores, keeping >= 8 rows to tile.
        while W * 2 <= 2048 and total % (W * 2) == 0 and total // (W * 2) >= 8:
            W *= 2
        return W
    # Fallback: the widest multiple of C that divides total (wider is better
    # even if not a multiple of 128), preferring to keep >= 8 rows.
    n_vec = total // C
    divisors = set()
    k = 1
    while k * k <= n_vec:
        if n_vec % k == 0:
            divisors.add(k)
            divisors.add(n_vec // k)
        k += 1
    candidates = sorted({d * C for d in divisors if d * C <= 8192}, reverse=True)
    for w in candidates:
        if total // w >= 8:
            return w
    return candidates[0] if candidates else C


def _pick_tile_rows(rows, W, budget_bytes, itemsize, sublane):
    """Row-tile TM: as large as the budget allows, aligned to the native
    sublane multiple, preferring an exact divisor of `rows` with an even number
    of grid steps (v7x 2-TC balance); never a single step when rows allow."""
    if rows <= 2 * sublane:
        return rows                       # full-extent block (always legal)
    tm_budget = max(sublane, (budget_bytes // (W * itemsize)) // sublane * sublane)
    tm_cap = min(tm_budget, max(sublane, (rows // 2) // sublane * sublane))
    floor = max(sublane, (tm_cap // 2) // sublane * sublane)
    best_div = None
    tm = tm_cap
    while tm >= floor:
        if rows % tm == 0:
            if (rows // tm) % 2 == 0:
                return tm                 # divisor of rows + even step count
            if best_div is None:
                best_div = tm
        tm -= sublane
    if best_div is not None:
        return best_div                   # divisor of rows (no ragged block)
    return tm_cap                         # ragged last block (masked, correct)


def affine22(xs, alpha_sym, alpha_asym):
    """Pallas implementation of Affine22.forward (reachable branch).

    xs: tuple of 4 arrays, each with the same shape (..., C), C = dim // 2.
    alpha_sym, alpha_asym: (C,) scale vectors.
    Returns a tuple of 4 arrays; dtype is the f32-promotion of each input's
    dtype (matching PyTorch's f32-parameter * activation promotion).
    """
    x0, x1, x2, x3 = xs
    shape = x0.shape
    C = shape[-1]
    assert all(x.shape == shape for x in xs), "all xs must share a shape"
    assert alpha_sym.shape == (C,) and alpha_asym.shape == (C,)

    total = math.prod(shape)
    W = _pick_width(total, C)
    rows = total // W
    reps = W // C

    # Stack the (tiled) scale vectors into one small (2, W) f32 array so only
    # one tiny constant-index DMA stream is needed.
    scales = jnp.stack([
        jnp.tile(alpha_sym.astype(jnp.float32).reshape(C), reps),
        jnp.tile(alpha_asym.astype(jnp.float32).reshape(C), reps),
    ])

    # Output dtype matches PyTorch promotion (f32 param * bf16 act -> f32).
    out_dtypes = tuple(jnp.result_type(jnp.float32, x.dtype) for x in xs)
    all_dtypes = [x.dtype for x in xs] + list(out_dtypes)
    itemsize = max(jnp.dtype(d).itemsize for d in all_dtypes)
    sublane = max(32 // jnp.dtype(d).itemsize for d in all_dtypes)  # 8/16/32

    # Per-generation per-stream tile budget: ~60% of physical VMEM across the
    # 16 double-buffered stream tiles, clamped to [1 MiB, 3 MiB].
    vmem_cap = _vmem_capacity_bytes()
    per_stream = int(vmem_cap * 0.6) // 16
    budget_bytes = max(1 * 1024 * 1024, min(per_stream, 3 * 1024 * 1024))

    TM = _pick_tile_rows(rows, W, budget_bytes, itemsize, sublane)
    grid = (pl.cdiv(rows, TM),)

    # Scoped-VMEM limit: actual double-buffered working set plus headroom,
    # never above physical capacity.
    tile_elems = TM * W
    stream_bytes = sum(tile_elems * jnp.dtype(d).itemsize for d in all_dtypes)
    scales_bytes = 2 * W * 4
    vmem_limit = 2 * stream_bytes + 2 * scales_bytes + 8 * 1024 * 1024
    vmem_limit = min(max(vmem_limit, 32 * 1024 * 1024), vmem_cap)

    x_flat = tuple(x.reshape(rows, W) for x in xs)

    scale_spec = pl.BlockSpec((2, W), lambda i: (0, 0))
    x_spec = pl.BlockSpec((TM, W), lambda i: (i, 0))

    out_shape = tuple(jax.ShapeDtypeStruct((rows, W), d) for d in out_dtypes)

    outs_flat = pl.pallas_call(
        affine22_kernel,
        out_shape=out_shape,
        grid=grid,
        in_specs=[scale_spec, x_spec, x_spec, x_spec, x_spec],
        out_specs=(x_spec, x_spec, x_spec, x_spec),
        compiler_params=pltpu.CompilerParams(
            dimension_semantics=("parallel",),
            vmem_limit_bytes=int(vmem_limit),
        ),
    )(scales, *x_flat)

    return tuple(o.reshape(shape) for o in outs_flat)


if __name__ == "__main__":
    key = jax.random.PRNGKey(0)

    def _ref(xs, a_s, a_a):
        # Pure-JAX reference (matches the reachable PyTorch forward branch).
        return (a_s * xs[0], a_s * xs[1], a_a * xs[2], a_a * xs[3])

    def _check(xs, a_s, a_a):
        outs = jax.block_until_ready(affine22(xs, a_s, a_a))
        refs = _ref(xs, a_s, a_a)
        for o, r in zip(outs, refs):
            assert o.shape == r.shape, (o.shape, r.shape)
            assert o.dtype == r.dtype, (o.dtype, r.dtype)
            assert jnp.allclose(o.astype(jnp.float32), r.astype(jnp.float32),
                                atol=1e-5, rtol=1e-5), "mismatch vs reference"

    def _make_case(key, B, N, dim, dtype):
        C = dim // 2
        k0, k1, k2, k3, ka, kb, key = jax.random.split(key, 7)
        xs = tuple(jax.random.normal(k, (B, N, C), dtype=dtype)
                   for k in (k0, k1, k2, k3))
        a_s = jnp.ones((C,), jnp.float32) + 0.1 * jax.random.normal(ka, (C,))
        a_a = jnp.ones((C,), jnp.float32) + 0.1 * jax.random.normal(kb, (C,))
        return key, xs, a_s, a_a

    # Case 1: lane-dense main path (W multiple of 128), f32, single block.
    key, xs, a_s, a_a = _make_case(key, 2, 8, 32, jnp.float32)
    _check(xs, a_s, a_a)

    # Case 2: fallback width (total not a multiple of lcm(C, 128)), bf16
    # activations (exercises the f32 promotion of outputs).
    key, xs, a_s, a_a = _make_case(key, 3, 5, 48, jnp.bfloat16)
    _check(xs, a_s, a_a)

    # Case 3: multi-step grid with a ragged final row-block (masked writeback).
    key, xs, a_s, a_a = _make_case(key, 4, 50, 64, jnp.float32)
    _check(xs, a_s, a_a)

    print("KERNEL_OK")
</pallas_src>

<mosaic_0001>
module attributes {stable_mosaic.version = 11 : i64} {
  func.func @affine22_kernel(%arg0: i32, %arg1: memref<2x128xf32, #tpu.memory_space<vmem>>, %arg2: memref<2x128xf32, #tpu.memory_space<vmem>>, %arg3: memref<2x128xf32, #tpu.memory_space<vmem>>, %arg4: memref<2x128xf32, #tpu.memory_space<vmem>>, %arg5: memref<2x128xf32, #tpu.memory_space<vmem>>, %arg6: memref<2x128xf32, #tpu.memory_space<vmem>>, %arg7: memref<2x128xf32, #tpu.memory_space<vmem>>, %arg8: memref<2x128xf32, #tpu.memory_space<vmem>>, %arg9: memref<2x128xf32, #tpu.memory_space<vmem>>) attributes {dimension_semantics = [#tpu.dimension_semantics<parallel>], iteration_bounds = array<i64: 1>, scalar_prefetch = 0 : i64, scratch_operands = 0 : i64, tpu.core_type = #tpu.core_type<tc>, window_params = [{pipeline_mode = #tpu.pipeline_mode<synchronous>, transform_indices = @transform_0, window_bounds = array<i64: 2, 128>}, {transform_indices = @transform_1, window_bounds = array<i64: 2, 128>}, {transform_indices = @transform_2, window_bounds = array<i64: 2, 128>}, {transform_indices = @transform_3, window_bounds = array<i64: 2, 128>}, {transform_indices = @transform_4, window_bounds = array<i64: 2, 128>}, {transform_indices = @transform_5, window_bounds = array<i64: 2, 128>}, {transform_indices = @transform_6, window_bounds = array<i64: 2, 128>}, {transform_indices = @transform_7, window_bounds = array<i64: 2, 128>}, {transform_indices = @transform_8, window_bounds = array<i64: 2, 128>}]} {
    %c0 = arith.constant 0 : index
    %c0_0 = arith.constant 0 : index
    %0 = vector.load %arg1[%c0, %c0_0] : memref<2x128xf32, #tpu.memory_space<vmem>>, vector<1x128xf32>
    %1 = vector.shape_cast %0 : vector<1x128xf32> to vector<1x128xf32>
    %2 = vector.broadcast %1 : vector<1x128xf32> to vector<2x128xf32>
    %c1 = arith.constant 1 : index
    %c0_1 = arith.constant 0 : index
    %3 = vector.load %arg1[%c1, %c0_1] : memref<2x128xf32, #tpu.memory_space<vmem>>, vector<1x128xf32>
    %4 = vector.shape_cast %3 : vector<1x128xf32> to vector<1x128xf32>
    %5 = vector.broadcast %4 : vector<1x128xf32> to vector<2x128xf32>
    %c0_2 = arith.constant 0 : index
    %c0_3 = arith.constant 0 : index
    %6 = vector.load %arg2[%c0_2, %c0_3] : memref<2x128xf32, #tpu.memory_space<vmem>>, vector<2x128xf32>
    %7 = arith.mulf %6, %2 : vector<2x128xf32>
    %c0_4 = arith.constant 0 : index
    %c0_5 = arith.constant 0 : index
    %8 = vector.load %arg6[%c0_4, %c0_5] : memref<2x128xf32, #tpu.memory_space<vmem>>, vector<2x128xf32>
    tpu.vector_store %arg6[%c0_4, %c0_5], %7 {strides = array<i32>} : memref<2x128xf32, #tpu.memory_space<vmem>>, vector<2x128xf32>,
    %c0_6 = arith.constant 0 : index
    %c0_7 = arith.constant 0 : index
    %9 = vector.load %arg3[%c0_6, %c0_7] : memref<2x128xf32, #tpu.memory_space<vmem>>, vector<2x128xf32>
    %10 = arith.mulf %9, %2 : vector<2x128xf32>
    %c0_8 = arith.constant 0 : index
    %c0_9 = arith.constant 0 : index
    %11 = vector.load %arg7[%c0_8, %c0_9] : memref<2x128xf32, #tpu.memory_space<vmem>>, vector<2x128xf32>
    tpu.vector_store %arg7[%c0_8, %c0_9], %10 {strides = array<i32>} : memref<2x128xf32, #tpu.memory_space<vmem>>, vector<2x128xf32>,
    %c0_10 = arith.constant 0 : index
    %c0_11 = arith.constant 0 : index
    %12 = vector.load %arg4[%c0_10, %c0_11] : memref<2x128xf32, #tpu.memory_space<vmem>>, vector<2x128xf32>
    %13 = arith.mulf %12, %5 : vector<2x128xf32>
    %c0_12 = arith.constant 0 : index
    %c0_13 = arith.constant 0 : index
    %14 = vector.load %arg8[%c0_12, %c0_13] : memref<2x128xf32, #tpu.memory_space<vmem>>, vector<2x128xf32>
    tpu.vector_store %arg8[%c0_12, %c0_13], %13 {strides = array<i32>} : memref<2x128xf32, #tpu.memory_space<vmem>>, vector<2x128xf32>,
    %c0_14 = arith.constant 0 : index
    %c0_15 = arith.constant 0 : index
    %15 = vector.load %arg5[%c0_14, %c0_15] : memref<2x128xf32, #tpu.memory_space<vmem>>, vector<2x128xf32>
    %16 = arith.mulf %15, %5 : vector<2x128xf32>
    %c0_16 = arith.constant 0 : index
    %c0_17 = arith.constant 0 : index
    %17 = vector.load %arg9[%c0_16, %c0_17] : memref<2x128xf32, #tpu.memory_space<vmem>>, vector<2x128xf32>
    tpu.vector_store %arg9[%c0_16, %c0_17], %16 {strides = array<i32>} : memref<2x128xf32, #tpu.memory_space<vmem>>, vector<2x128xf32>,
    return
  }
  func.func @transform_0(%arg0: i32) -> (i32, i32) {
    %c0_i32 = arith.constant 0 : i32
    %c0_i32_0 = arith.constant 0 : i32
    %c0_i32_1 = arith.constant 0 : i32
    return %c0_i32, %c0_i32_0 : i32, i32
  }
  func.func @transform_1(%arg0: i32) -> (i32, i32) {
    %c0_i32 = arith.constant 0 : i32
    %c0_i32_0 = arith.constant 0 : i32
    return %arg0, %c0_i32 : i32, i32
  }
  func.func @transform_2(%arg0: i32) -> (i32, i32) {
    %c0_i32 = arith.constant 0 : i32
    %c0_i32_0 = arith.constant 0 : i32
    return %arg0, %c0_i32 : i32, i32
  }
  func.func @transform_3(%arg0: i32) -> (i32, i32) {
    %c0_i32 = arith.constant 0 : i32
    %c0_i32_0 = arith.constant 0 : i32
    return %arg0, %c0_i32 : i32, i32
  }
  func.func @transform_4(%arg0: i32) -> (i32, i32) {
    %c0_i32 = arith.constant 0 : i32
    %c0_i32_0 = arith.constant 0 : i32
    return %arg0, %c0_i32 : i32, i32
  }
  func.func @transform_5(%arg0: i32) -> (i32, i32) {
    %c0_i32 = arith.constant 0 : i32
    %c0_i32_0 = arith.constant 0 : i32
    return %arg0, %c0_i32 : i32, i32
  }
  func.func @transform_6(%arg0: i32) -> (i32, i32) {
    %c0_i32 = arith.constant 0 : i32
    %c0_i32_0 = arith.constant 0 : i32
    return %arg0, %c0_i32 : i32, i32
  }
  func.func @transform_7(%arg0: i32) -> (i32, i32) {
    %c0_i32 = arith.constant 0 : i32
    %c0_i32_0 = arith.constant 0 : i32
    return %arg0, %c0_i32 : i32, i32
  }
  func.func @transform_8(%arg0: i32) -> (i32, i32) {
    %c0_i32 = arith.constant 0 : i32
    %c0_i32_0 = arith.constant 0 : i32
    return %arg0, %c0_i32 : i32, i32
  }
}

</mosaic_0001>

<bundles_post_ra>
// kernel: tpu_custom_call.1
= control target key start
LH: loop header
LB: loop body
LE: loop exit
PB: predicated region body
PF: predicated region fallthrough
CT: control target
= control target key end

     0   :  { %14 = vsyncpa [#allocation3], 0  ;;  %s464_s0 = inlined_call_operand.hbm [shape: f32[2,128], index: 0, kind: input, shape index: {}]   ;;  %s465_s1 = inlined_call_operand.hbm [shape: f32[2,128], index: 1, kind: input, shape index: {}]   ;;  %s466_s2 = inlined_call_operand.hbm [shape: f32[2,128], index: 2, kind: input, shape index: {}]   ;;  %s467_s3 = inlined_call_operand.vmem [shape: f32[2,128], index: 3, kind: input, shape index: {}]   ;;  %s468_s4 = inlined_call_operand.hbm [shape: f32[2,128], index: 4, kind: input, shape index: {}]   ;;  %s469_s5 = inlined_call_operand.hbm [shape: f32[2,128], index: 5, kind: output, shape index: {0}]   ;;  %s470_s6 = inlined_call_operand.hbm [shape: f32[2,128], index: 6, kind: output, shape index: {1}]   ;;  %s471_s7 = inlined_call_operand.hbm [shape: f32[2,128], index: 7, kind: output, shape index: {2}]   ;;  %s472_s8 = inlined_call_operand.hbm [shape: f32[2,128], index: 8, kind: output, shape index: {3}]  }
   0x1   :  { %15 = vsyncpa [#allocation6], 0 }
   0x2   :  { %16 = vsyncpa [#allocation9], 0 }
   0x3   :  { %17 = vsyncpa [#allocation4], 0 }
   0x4   :  { %18 = vsyncpa [#allocation12], 0  ;;  %s36_s29 = sshll.u32 %s465_s1, 4  ;;  %s37_s29 = int_to_ptr.hbm [resolvable:$true] %s36_s29 }
   0x5   :  { %19 = vsyncpa [#allocation15], 0  ;;  %s378_s30 = smov [#allocation5]   ;;  %s25_s12 = sshll.u32 %s464_s0, 4  ;;  %s26_s12 = int_to_ptr.hbm [resolvable:$true] %s25_s12 }
   0x6   :  { %s38_s9 = sshll.u32 %s378_s30, 4  ;;  %s379_s13 = smov [#allocation2]   ;;  %s39_s9 = int_to_ptr.vmem [resolvable:$true] %s38_s9 }
   0x7   :  { %41 = dma.hbm_to_vmem [thread:$0]  %s37_s29, 32, %s39_s9, [#allocation6]  }
   0x8   :  { %s27_s14 = sshll.u32 %s379_s13, 4  ;;  %s47_s17 = sshll.u32 %s466_s2, 4  ;;  %s28_s14 = int_to_ptr.vmem [resolvable:$true] %s27_s14  ;;  %s48_s17 = int_to_ptr.hbm [resolvable:$true] %s47_s17 }
   0x9   :  { %30 = dma.hbm_to_vmem [thread:$0]  %s26_s12, 32, %s28_s14, [#allocation3]  }
   0xa   :  { %s60_s19 = sshll.u32 %s468_s4, 4  ;;  %s380_s20 = smov [#allocation7]   ;;  %s61_s19 = int_to_ptr.hbm [resolvable:$true] %s60_s19 }
   0xb   :  { %s49_s21 = sshll.u32 %s380_s20, 4  ;;  %s381_s0 = smov [#allocation8]   ;;  %s50_s21 = int_to_ptr.vmem [resolvable:$true] %s49_s21 }
   0xc   :  { %52 = dma.hbm_to_vmem [thread:$0]  %s48_s17, 32, %s50_s21, [#allocation6]  }
   0xd   :  { %s62_s22 = sshll.u32 %s381_s0, 4  ;;  %s63_s22 = int_to_ptr.vmem [resolvable:$true] %s62_s22 }
   0xe   :  { %65 = dma.hbm_to_vmem [thread:$0]  %s61_s19, 32, %s63_s22, [#allocation9]  }
   0xf   :  { %366 = dma.done.wait [#allocation3], 32  }
  0x10   :  { %367 = vsyncadd [#allocation3], 4294967264 }
  0x11   :  { %368 = dma.done.wait [#allocation6], 64  }
  0x12   :  { %369 = vsyncadd [#allocation6], 4294967232 }
  0x13   :  { %370 = dma.done.wait [#allocation9], 32  }
  0x14   :  { %371 = vsyncadd [#allocation9], 4294967264  ;;  %s382_s2 = smov [#allocation11]   ;;  %s116_s25 = sshll.u32 %s470_s6, 4  ;;  %v172_v0 = vld [vmem:[#allocation2] ss:$0 sm:$0xff]  ;;  %s117_s25 = int_to_ptr.hbm [resolvable:$true] %s116_s25 }
  0x15   :  { %s443_s23 = sshll.u32 %s382_s2, 4  ;;  %s383_s26 = smov [#allocation10]   ;;  %v89_v1 = vld [vmem:[#allocation7] sm:$0x3]  ;;  %v86_v2 = vld [vmem:[#allocation5] sm:$0x3]  ;;  %s115_s23 = int_to_ptr.vmem [resolvable:$true] %s443_s23 }
  0x16   :  { %s448_s27 = sshll.u32 %s383_s26, 4  ;;  %s105_s30 = sshll.u32 %s469_s5, 4  ;;  %v173_v3 = vld [vmem:[#allocation2 + $0x1] ss:$0 sm:$0xff]  ;;  %v90_v4 = vmul.f32 %v172_v0, %v89_v1  ;;  %v87_v5 = vmul.f32 %v172_v0, %v86_v2  ;;  %v95_v7 = vld [vmem:[#allocation8] sm:$0x3]  ;;  %s104_s27 = int_to_ptr.vmem [resolvable:$true] %s448_s27  ;;  %s106_s30 = int_to_ptr.hbm [resolvable:$true] %s105_s30 }
  0x17   :  { %s127_s11 = sshll.u32 %s471_s7, 4  ;;  %s384_s12 = smov [#allocation13]   ;;  %v92_v6 = vld [vmem:[%s467_s3] sm:$0x3]  ;;  %v96_v9 = vmul.f32 %v173_v3, %v95_v7  ;;  %s128_s11 = int_to_ptr.hbm [resolvable:$true] %s127_s11 }
  0x18   :  { %s125_s13 = sshll.u32 %s384_s12, 4  ;;  %s138_s15 = sshll.u32 %s472_s8, 4  ;;  %v93_v8 = vmul.f32 %v173_v3, %v92_v6  ;;  %91 = vst [vmem:[#allocation11] sm:$0x3] %v90_v4  ;;  %s126_s13 = int_to_ptr.vmem [resolvable:$true] %s125_s13  ;;  %s139_s15 = int_to_ptr.hbm [resolvable:$true] %s138_s15 }
  0x19   :  { %s385_s16 = smov [#allocation14]   ;;  %88 = vst [vmem:[#allocation10] sm:$0x3] %v87_v5 }
  0x1a   :  { %s136_s17 = sshll.u32 %s385_s16, 4  ;;  %94 = vst [vmem:[#allocation13] sm:$0x3] %v93_v8  ;;  %s137_s17 = int_to_ptr.vmem [resolvable:$true] %s136_s17 }
  0x1b   :  { %119 = dma.vmem_to_hbm [thread:$0]  %s115_s23, 32, %s117_s25, [#allocation12]   ;;  %97 = vst [vmem:[#allocation14] sm:$0x3] %v96_v9 }
  0x1c   :  { %108 = dma.vmem_to_hbm [thread:$0]  %s104_s27, 32, %s106_s30, [#allocation4]  }
  0x1d   :  { %130 = dma.vmem_to_hbm [thread:$0]  %s126_s13, 32, %s128_s11, [#allocation12]  }
  0x1e   :  { %141 = dma.vmem_to_hbm [thread:$0]  %s137_s17, 32, %s139_s15, [#allocation15]  }
  0x1f   :  { %372 = dma.done.wait [#allocation4], 32  }
  0x20   :  { %373 = vsyncadd [#allocation4], 4294967264 }
  0x21   :  { %374 = dma.done.wait [#allocation12], 64  }
  0x22   :  { %375 = vsyncadd [#allocation12], 4294967232 }
  0x23   :  { %376 = dma.done.wait [#allocation15], 32  }
  0x24   :  { %377 = vsyncadd [#allocation15], 4294967264 }
  0x25   :  { %158 = vsyncpa [#allocation3], 1 }
  0x26   :  { %159 = vsyncpa [#allocation6], 1 }
  0x27   :  { %160 = vsyncpa [#allocation9], 1 }
  0x28   :  { %161 = vsyncpa [#allocation4], 1 }
  0x29   :  { %162 = vsyncpa [#allocation12], 1 }
  0x2a   :  { %163 = vsyncpa [#allocation15], 1 }

</bundles_post_ra>
